<compile_context>
chip_gen: v5e
topology: v5e:2x2
jax: 0.10.0
libtpu: 0.0.40
codegen_flags: <defaults>
</compile_context>

<pallas_src>
import functools

import jax
import jax.numpy as jnp
from jax import lax
from jax.experimental import pallas as pl
from jax.experimental.pallas import tpu as pltpu


def _contrastive_loss_kernel(z_ref, loss_ref, denom_ref, pos_ref, *,
                             tile: int, lane_w: int, n_col_blocks: int,
                             shift_blocks: int):
    """One row block of the InfoNCE forward; columns streamed from resident z."""
    i = pl.program_id(0)

    row_start = pl.multiple_of(i * tile, tile)
    zr = z_ref[pl.ds(row_start, tile), :]               # [T, Dp] (matmul dtype)

    denom_ref[...] = jnp.zeros_like(denom_ref)          # [T, lane_w] f32
    pos_ref[...] = jnp.zeros_like(pos_ref)               # [T, 1]      f32

    partner = (i + shift_blocks) % n_col_blocks
    diag = (lax.broadcasted_iota(jnp.int32, (tile, tile), 0) ==
            lax.broadcasted_iota(jnp.int32, (tile, tile), 1))

    @pl.loop(0, n_col_blocks)
    def _col_step(j):
        col_start = pl.multiple_of(j * tile, tile)
        zc = z_ref[pl.ds(col_start, tile), :]            # [T, Dp]

        # [T, T] similarity tile on the MXU; inv_temp already folded into z,
        # so sim == cosine_sim / temperature.  Contract last dims (no
        # transposed copy of the RHS).
        sim = lax.dot_general(
            zr, zc,
            dimension_numbers=(((1,), (1,)), ((), ())),
            preferred_element_type=jnp.float32)

        # exp of the tile; the self-similarity diagonal is masked out on the
        # j == i tile so it is never added (exact, no subtraction needed).
        e = jnp.exp(sim)
        e = jnp.where(jnp.logical_and(diag, j == i), 0.0, e)

        # Lane-dense accumulate: fold the [T, T] exp tile into [T, lane_w]
        # with vreg-aligned lane chunks (VPU adds); the XLU cross-lane reduce
        # is deferred to the finalize below.
        chunk = e[:, 0:lane_w]
        for c in range(1, tile // lane_w):
            chunk = chunk + e[:, c * lane_w:(c + 1) * lane_w]
        denom_ref[...] += chunk

        # Partner tile: positives[k] = sim(z_k, z_{(k+B) mod N}) / T, which is
        # exactly the local diagonal of this tile (tile size divides B).
        @pl.when(j == partner)
        def _positives():
            pos_ref[...] = jnp.sum(jnp.where(diag, sim, 0.0),
                                   axis=1, keepdims=True)

    # Finalize (once per row block): per-row loss = log(denom) - pos/T.
    # TODO(synk): lane-dense (1, tile) output blocks (review item) skipped so
    # the block shapes stay legal at tiny demo shapes; the (tile, 1) store
    # happens only once per row block.
    denom = jnp.sum(denom_ref[...], axis=1, keepdims=True)   # [T, 1]
    loss_ref[...] = jnp.log(denom) - pos_ref[...]


def _pick_tile(batch_size: int) -> int:
    for t in (256, 128, 64, 32, 16, 8):
        if batch_size % t == 0:
            return t
    # TODO(synk): pad + column-mask ragged batches; currently need batch % 8 == 0.
    raise ValueError("batch_size must be a multiple of 8 for the tiled kernel")


def contrastive_loss(proj_1, proj_2, temperature: float = 0.5,
                     matmul_dtype=jnp.bfloat16):
    """JAX/Pallas equivalent of ContrastiveLoss(batch_size, temperature).forward."""
    assert proj_1.shape == proj_2.shape and proj_1.ndim == 2
    b, d = proj_1.shape
    n = 2 * b
    tile = _pick_tile(b)

    matmul_dtype = jnp.dtype(matmul_dtype)
    if matmul_dtype == jnp.dtype(jnp.bfloat16) and tile < 16:
        # bf16 blocks need >= 16 sublanes; tiny ragged batches fall back to f32.
        matmul_dtype = jnp.dtype(jnp.float32)

    n_blk = n // tile                 # always >= 2 (tile divides b), feeds both
    shift_blocks = b // tile          # v7x TensorCores via the "parallel" axis
    lane_w = min(tile, 128)
    inv_temp = 1.0 / float(temperature)

    # --- fused wrapper pass: concat + f32 L2 normalize + temperature fold ----
    reps = jnp.concatenate([proj_1, proj_2], axis=0).astype(jnp.float32)  # [N, D]
    sq = jnp.sum(reps * reps, axis=1, keepdims=True)
    # x / max(||x||, 1e-12), scaled by sqrt(1/T) so sim is pre-divided by T.
    z = reps * (lax.rsqrt(jnp.maximum(sq, 1e-24)) * jnp.float32(inv_temp) ** 0.5)
    d_pad = max(128, ((d + 127) // 128) * 128)          # MXU-friendly lane dim
    if d_pad != d:
        z = jnp.pad(z, ((0, 0), (0, d_pad - d)))
    z = z.astype(matmul_dtype)                           # bf16 halves DMA/VMEM

    kernel = functools.partial(
        _contrastive_loss_kernel,
        tile=tile, lane_w=lane_w,
        n_col_blocks=n_blk, shift_blocks=shift_blocks,
    )

    # Explicit VMEM budget: resident z (assume double-buffered) + scratch.
    z_bytes = n * d_pad * z.dtype.itemsize
    scratch_bytes = tile * (lane_w + 1) * 4
    vmem_limit = int(min(max(2 * z_bytes + scratch_bytes + (8 << 20), 32 << 20),
                         64 << 20))
    # TODO(synk): stream column blocks from HBM (2-D grid or manual DMA) when
    # the resident z would exceed the VMEM budget (very large N * Dp).

    per_row_loss = pl.pallas_call(
        kernel,
        out_shape=jax.ShapeDtypeStruct((n, 1), jnp.float32),
        grid_spec=pltpu.PrefetchScalarGridSpec(
            num_scalar_prefetch=0,
            grid=(n_blk,),
            in_specs=[
                # Whole normalized matrix resident in VMEM (constant index map
                # => DMA'd once); row and column tiles are sliced in-kernel.
                pl.BlockSpec((n, d_pad), lambda i: (0, 0)),
            ],
            out_specs=pl.BlockSpec((tile, 1), lambda i: (i, 0)),
            scratch_shapes=[
                pltpu.VMEM((tile, lane_w), jnp.float32),  # lane-dense denom acc
                pltpu.VMEM((tile, 1), jnp.float32),        # positives
            ],
        ),
        compiler_params=pltpu.CompilerParams(
            dimension_semantics=("parallel",),
            vmem_limit_bytes=vmem_limit),
    )(z)

    return jnp.sum(per_row_loss) / jnp.float32(n)


def _reference_loss(proj_1, proj_2, temperature: float = 0.5):
    # Pure-JAX reference mirroring the PyTorch module, for a correctness check.
    b = proj_1.shape[0]

    def norm(x):
        return x / jnp.maximum(jnp.linalg.norm(x, axis=1, keepdims=True), 1e-12)

    reps = jnp.concatenate([norm(proj_1), norm(proj_2)], axis=0)
    sim = reps @ reps.T
    n = 2 * b
    sim_ij = jnp.diagonal(sim, offset=b)
    sim_ji = jnp.diagonal(sim, offset=-b)
    positives = jnp.concatenate([sim_ij, sim_ji], axis=0)
    mask = 1.0 - jnp.eye(n, dtype=jnp.float32)
    nominator = jnp.exp(positives / temperature)
    denominator = jnp.sum(mask * jnp.exp(sim / temperature), axis=1)
    all_losses = -jnp.log(nominator / denominator)
    return jnp.sum(all_losses) / n


if __name__ == "__main__":
    batch_size = 16
    embed_dim = 32
    temperature = 0.5

    key = jax.random.PRNGKey(0)
    k1, k2 = jax.random.split(key)
    proj_1 = jax.random.normal(k1, (batch_size, embed_dim), dtype=jnp.float32)
    proj_2 = jax.random.normal(k2, (batch_size, embed_dim), dtype=jnp.float32)

    ref = _reference_loss(proj_1, proj_2, temperature)

    # f32 MXU path: tight tolerance against the pure-JAX reference.
    loss_f32 = jax.block_until_ready(
        contrastive_loss(proj_1, proj_2, temperature, matmul_dtype=jnp.float32))
    assert jnp.allclose(loss_f32, ref, rtol=1e-4, atol=1e-4), (loss_f32, ref)

    # bf16 MXU path (default, recommended on v5e/v6e/v7x): looser tolerance.
    loss_bf16 = jax.block_until_ready(
        contrastive_loss(proj_1, proj_2, temperature))
    assert jnp.allclose(loss_bf16, ref, rtol=2e-2, atol=2e-2), (loss_bf16, ref)

    print("KERNEL_OK")
</pallas_src>

<mosaic_0001>
module attributes {stable_mosaic.version = 11 : i64} {
  func.func @_contrastive_loss_kernel(%arg0: i32, %arg1: memref<32x128xf32, #tpu.memory_space<vmem>>, %arg2: memref<16x1xf32, #tpu.memory_space<vmem>>, %arg3: memref<16x16xf32, #tpu.memory_space<vmem>>, %arg4: memref<16x1xf32, #tpu.memory_space<vmem>>) attributes {dimension_semantics = [#tpu.dimension_semantics<parallel>], iteration_bounds = array<i64: 2>, scalar_prefetch = 0 : i64, scratch_operands = 2 : i64, tpu.core_type = #tpu.core_type<tc>, window_params = [{pipeline_mode = #tpu.pipeline_mode<synchronous>, transform_indices = @transform_0, window_bounds = array<i64: 32, 128>}, {transform_indices = @transform_1, window_bounds = array<i64: 16, 1>}]} {
    %c16_i32 = arith.constant 16 : i32
    %0 = arith.muli %arg0, %c16_i32 : i32
    %1 = tpu.assume_multiple %0, 16 : i32
    %2 = arith.index_cast %1 : i32 to index
    %c0 = arith.constant 0 : index
    %3 = vector.load %arg1[%2, %c0] : memref<32x128xf32, #tpu.memory_space<vmem>>, vector<16x128xf32>
    %cst = arith.constant 0.000000e+00 : f32
    %4 = vector.broadcast %cst : f32 to vector<16x16xf32>
    %c0_0 = arith.constant 0 : index
    %c0_1 = arith.constant 0 : index
    %5 = vector.load %arg3[%c0_0, %c0_1] : memref<16x16xf32, #tpu.memory_space<vmem>>, vector<16x16xf32>
    tpu.vector_store %arg3[%c0_0, %c0_1], %4 {strides = array<i32>} : memref<16x16xf32, #tpu.memory_space<vmem>>, vector<16x16xf32>,
    %cst_2 = arith.constant 0.000000e+00 : f32
    %6 = vector.broadcast %cst_2 : f32 to vector<16x1xf32>
    %c0_3 = arith.constant 0 : index
    %c0_4 = arith.constant 0 : index
    %7 = vector.load %arg4[%c0_3, %c0_4] : memref<16x1xf32, #tpu.memory_space<vmem>>, vector<16x1xf32>
    tpu.vector_store %arg4[%c0_3, %c0_4], %6 {strides = array<i32>} : memref<16x1xf32, #tpu.memory_space<vmem>>, vector<16x1xf32>,
    %c1_i32 = arith.constant 1 : i32
    %8 = arith.addi %arg0, %c1_i32 : i32
    %c2_i32 = arith.constant 2 : i32
    %c0_i32 = arith.constant 0 : i32
    %9 = arith.cmpi eq, %c2_i32, %c0_i32 : i32
    %c1_i32_5 = arith.constant 1 : i32
    %10 = arith.select %9, %c1_i32_5, %c2_i32 : i32
    %11 = arith.remsi %8, %10 : i32
    %c0_i32_6 = arith.constant 0 : i32
    %12 = arith.cmpi ne, %11, %c0_i32_6 : i32
    %c0_i32_7 = arith.constant 0 : i32
    %13 = arith.cmpi slt, %11, %c0_i32_7 : i32
    %c0_i32_8 = arith.constant 0 : i32
    %14 = arith.cmpi slt, %10, %c0_i32_8 : i32
    %15 = arith.xori %13, %14 : i1
    %16 = arith.andi %15, %12 : i1
    %17 = arith.addi %11, %10 : i32
    %18 = arith.select %16, %17, %11 : i32
    %19 = tpu.iota {dimensions = array<i32: 0>} : vector<16x16xi32>
    %20 = tpu.iota {dimensions = array<i32: 1>} : vector<16x16xi32>
    %21 = arith.cmpi eq, %19, %20 : vector<16x16xi32>
    %c0_i32_9 = arith.constant 0 : i32
    %c2_i32_10 = arith.constant 2 : i32
    %22 = arith.addi %c0_i32_9, %c2_i32_10 : i32
    %c1_i32_11 = arith.constant 1 : i32
    scf.for %arg5 = %c0_i32_9 to %22 step %c1_i32_11  : i32 {
      %c1_i32_20 = arith.constant 1 : i32
      %30 = arith.muli %arg5, %c1_i32_20 : i32
      %c0_i32_21 = arith.constant 0 : i32
      %31 = arith.addi %c0_i32_21, %30 : i32
      %c16_i32_22 = arith.constant 16 : i32
      %32 = arith.muli %31, %c16_i32_22 : i32
      %33 = tpu.assume_multiple %32, 16 : i32
      %34 = arith.index_cast %33 : i32 to index
      %c0_23 = arith.constant 0 : index
      %35 = vector.load %arg1[%34, %c0_23] : memref<32x128xf32, #tpu.memory_space<vmem>>, vector<16x128xf32>
      %cst_24 = arith.constant dense<0.000000e+00> : vector<16x16xf32>
      %36 = tpu.matmul %3, %35, %cst_24 {dimension_numbers = #tpu.dot_dimension_numbers<[1], [1], [0], [0], [0, 0, 1, 0], [], []>} : vector<16x128xf32>, vector<16x128xf32>, vector<16x16xf32> -> vector<16x16xf32>
      %37 = math.exp %36 : vector<16x16xf32>
      %38 = arith.cmpi eq, %31, %arg0 : i32
      %39 = vector.broadcast %38 : i1 to vector<16x16xi1>
      %40 = arith.andi %21, %39 : vector<16x16xi1>
      %cst_25 = arith.constant 0.000000e+00 : f32
      %41 = vector.broadcast %cst_25 : f32 to vector<16x16xf32>
      %42 = arith.select %40, %41, %37 : vector<16x16xi1>, vector<16x16xf32>
      %c0_26 = arith.constant 0 : index
      %c0_27 = arith.constant 0 : index
      %43 = vector.load %arg3[%c0_26, %c0_27] : memref<16x16xf32, #tpu.memory_space<vmem>>, vector<16x16xf32>
      %44 = arith.addf %43, %42 : vector<16x16xf32>
      %c0_28 = arith.constant 0 : index
      %c0_29 = arith.constant 0 : index
      %45 = vector.load %arg3[%c0_28, %c0_29] : memref<16x16xf32, #tpu.memory_space<vmem>>, vector<16x16xf32>
      tpu.vector_store %arg3[%c0_28, %c0_29], %44 {strides = array<i32>} : memref<16x16xf32, #tpu.memory_space<vmem>>, vector<16x16xf32>,
      %46 = arith.cmpi eq, %31, %18 : i32
      %47 = arith.extui %46 : i1 to i32
      %c0_i32_30 = arith.constant 0 : i32
      %48 = arith.cmpi ne, %47, %c0_i32_30 : i32
      scf.if %48 {
        %cst_31 = arith.constant 0.000000e+00 : f32
        %49 = vector.broadcast %cst_31 : f32 to vector<16x16xf32>
        %50 = arith.select %21, %36, %49 : vector<16x16xi1>, vector<16x16xf32>
        %cst_32 = arith.constant dense<0.000000e+00> : vector<16xf32>
        %51 = vector.multi_reduction <add>, %50, %cst_32 [1] : vector<16x16xf32> to vector<16xf32>
        %52 = vector.shape_cast %51 : vector<16xf32> to vector<16x1xf32>
        %c0_33 = arith.constant 0 : index
        %c0_34 = arith.constant 0 : index
        %53 = vector.load %arg4[%c0_33, %c0_34] : memref<16x1xf32, #tpu.memory_space<vmem>>, vector<16x1xf32>
        tpu.vector_store %arg4[%c0_33, %c0_34], %52 {strides = array<i32>} : memref<16x1xf32, #tpu.memory_space<vmem>>, vector<16x1xf32>,
      } else {
      }
    }
    %c2_i32_12 = arith.constant 2 : i32
    %c0_13 = arith.constant 0 : index
    %c0_14 = arith.constant 0 : index
    %23 = vector.load %arg3[%c0_13, %c0_14] : memref<16x16xf32, #tpu.memory_space<vmem>>, vector<16x16xf32>
    %cst_15 = arith.constant dense<0.000000e+00> : vector<16xf32>
    %24 = vector.multi_reduction <add>, %23, %cst_15 [1] : vector<16x16xf32> to vector<16xf32>
    %25 = vector.shape_cast %24 : vector<16xf32> to vector<16x1xf32>
    %26 = math.log %25 : vector<16x1xf32>
    %c0_16 = arith.constant 0 : index
    %c0_17 = arith.constant 0 : index
    %27 = vector.load %arg4[%c0_16, %c0_17] : memref<16x1xf32, #tpu.memory_space<vmem>>, vector<16x1xf32>
    %28 = arith.subf %26, %27 : vector<16x1xf32>
    %c0_18 = arith.constant 0 : index
    %c0_19 = arith.constant 0 : index
    %29 = vector.load %arg2[%c0_18, %c0_19] : memref<16x1xf32, #tpu.memory_space<vmem>>, vector<16x1xf32>
    tpu.vector_store %arg2[%c0_18, %c0_19], %28 {strides = array<i32>} : memref<16x1xf32, #tpu.memory_space<vmem>>, vector<16x1xf32>,
    return
  }
  func.func @transform_0(%arg0: i32) -> (i32, i32) {
    %c0_i32 = arith.constant 0 : i32
    %c0_i32_0 = arith.constant 0 : i32
    %c0_i32_1 = arith.constant 0 : i32
    return %c0_i32, %c0_i32_0 : i32, i32
  }
  func.func @transform_1(%arg0: i32) -> (i32, i32) {
    %c0_i32 = arith.constant 0 : i32
    %c0_i32_0 = arith.constant 0 : i32
    return %arg0, %c0_i32 : i32, i32
  }
}

</mosaic_0001>

<bundles_post_ra>
// kernel: tpu_custom_call.1
= control target key start
LH: loop header
LB: loop body
LE: loop exit
PB: predicated region body
PF: predicated region fallthrough
CT: control target
= control target key end

     0   :  { %6 = vsyncpa [#allocation5], 0  ;;  %s413_s6 = smov 0   ;;  %s493_s0 = inlined_call_operand.hbm [shape: f32[32,128], index: 0, kind: input, shape index: {}]   ;;  %s494_s1 = inlined_call_operand.vmem [shape: f32[32,1], index: 1, kind: output, shape index: {}]  }
   0x1 LB: > { %s75_s9 = sshll.u32 %s493_s0, 4  ;;  %s422_s10 = sadd.s32 4294967295, %s393_s6   ;;  %s393_s6 = sphi %s413_s6, %s12_s6   ;;  %s76_s9 = int_to_ptr.hbm [resolvable:$true] %s75_s9 }
   0x2   : > { %p295_p0 = scmp.ge.s32.totalorder %s393_s6, 1  ;;  %p64_p1 = scmp.lt.s32.totalorder %s393_s6, 3 }
   0x3   : > { %p319_p2 = scmp.eq.s32.totalorder %s422_s10, 0  ;;  %s399_s11 = smov [#allocation4]  }
   0x4   : > { %p65_p3 = pnand %p295_p0, %p64_p1  ;;  %s77_s12 = sshll.u32 %s399_s11, 4  ;;  %s78_s12 = int_to_ptr.vmem [resolvable:$true] %s77_s12 }
   0x5   : > { %s400_s13 = smov 128   ;;  %s401_s14 = smov 8  }
   0x6   : > { %p315_p4 = pneg %p65_p3  ;;  %93 = sbr.rel (%p65_p3) target bundleno = 443 (0x1bb), region = 24 }
   0x8   : > { %p316_p5 = pnand %p319_p2, %p315_p4 }
   0xa   : > { %318 = dma.hbm_to_vmem [thread:$0]  (!%p316_p5), %s76_s9, 512, %s78_s12, [#allocation5], %s400_s13, %s400_s13, %s401_s14  }
   0xb   : > { %388 = dma.done.wait (%p319_p2), [#allocation5], 512  }
   0xc   : > { %390 = vsyncadd (%p319_p2), [#allocation5], 4294966784  ;;  %s301_s15 = sshll.u32 %s422_s10, 4  ;;  %s299_s16 = sshll.u32 %s422_s10, 1  ;;  %vm119_vm0 = vcmask 130048   ;;  %v138_v0 = vlaneseq  ;;  %v402_v1 = vmov 0.0  }
   0xd   : > { %p110_p6 = scmp.lt.s32.totalorder %s299_s16, 3  ;;  %120 = vst.msk [vmem:[#allocation2] sm:$0xff] %vm119_vm0, %v402_v1  ;;  %vm122_vm1 = vcmask 7168   ;;  %s125_s17 = sadd.s32 1, %s422_s10 }
   0xe   : > { %121 = vst.msk [vmem:[#allocation2 + $0x8] sm:$0xff] %vm119_vm0, %v402_v1  ;;  %v432_v2 = vshrl.u32 %v138_v0, 7  ;;  %v434_v3 = vand.u32 127, %v138_v0  ;;  %p126_p7 = scmp.lt.s32.totalorder %s125_s17, 0  ;;  %s127_s18 = ssub.s32 0, %s125_s17 }
   0xf   : > { %s496_s16 = smov (!%p110_p6, %s299_s16), 3  ;;  %123 = vst.msk [vmem:[#allocation3] sm:$0xff] %vm122_vm1, %v402_v1  ;;  %s302_s20 = smin.u32 %s127_s18, %s125_s17 }
  0x10   : > { %v438_v4 = vadd.s32 8, %v432_v2  ;;  %vm143_vm2 = vcmp.eq.s32.totalorder %v432_v2, %v434_v3  ;;  %124 = vst.msk [vmem:[#allocation3 + $0x8] sm:$0xff] %vm122_vm1, %v402_v1  ;;  %s300_s19 = sshll.u32 %s496_s16, 3  ;;  %s129_s24 = sand.u32 1, %s302_s20  }
  0x11   : > { %s446_s23 = scalar_lea.vmem %s494_s1, %s300_s19  ;;  %s116_s25 = scalar_lea.vmem [#allocation4], %s301_s15 }
  0x12   : > { %vm144_vm3 = vcmp.eq.s32.totalorder %v438_v4, %v434_v3  ;;  %v117_v5 = vld [vmem:[%s116_s25] sm:$0xff]  ;;  %v118_v6 = vld [vmem:[%s116_s25 + $0x8] sm:$0xff]  ;;  %s130_s26 = ssub.s32 0, %s129_s24  ;;  %s453_s28 = smov 0  }
  0x13   : > { %s498_s26 = smov (!%p126_p7, %s130_s26), %s129_s24 }
  0x14   : > { %p304_p8 = scmp.lt.s32.totalorder %s498_s26, 0  ;;  %s136_s27 = sadd.s32 2, %s498_s26 }
  0x16   : > { %s500_s27 = smov (!%p304_p8, %s136_s27), %s498_s26 }
  0x17 LB: >> { %s305_s29 = sshll.u32 %s397_s28, 4  ;;  %p182_p9 = scmp.eq.s32.totalorder %s397_s28, %s422_s10  ;;  %v190_v14 = vld [vmem:[#allocation2] sm:$0xff]  ;;  %v191_v16 = vld [vmem:[#allocation2 + $0x8] sm:$0xff]  ;;  %s397_s28 = sphi %s453_s28, %s150_s28  }
  0x18   : >> { %s152_s30 = scalar_lea.vmem [#allocation4], %s305_s29  ;;  %p306_p10 = scmp.ne.s32.totalorder %s397_s28, %s500_s27 }
  0x19   : >> { %v154_v7 = vld [vmem:[%s152_s30 + $0x8] sm:$0xff]  ;;  %v153_v8 = vld [vmem:[%s152_s30] sm:$0xff]  ;;  %s183_s2 = scalar_select %p182_p9, 1, 0 }
  0x1a   : >> { %169 = vmatpush.xpose.msra.mxu0 %v154_v7  ;;  %309 = vmatpush.xpose.msra.mxu1 %v154_v7 }
  0x1b   : >> { %v184_v11 = vstv %s183_s2 }
  0x1c   : >> { %vm185_vm4 = vcmp.eq.s32.totalorder %v184_v11, 1 }
  0x1d   : >> { %vm186_vm5 = vmand %vm143_vm2, %vm185_vm4 }
  0x1e   : >> { %170 = vmatpush.xpose.msra.mxu0 %v153_v8  ;;  %310 = vmatpush.xpose.msra.mxu1 %v153_v8  ;;  %vm187_vm6 = vmand %vm144_vm3, %vm185_vm4 }
  0x21   : >> { %171 = vmatmul.f32.vlgmr.msra.gmra.mxu0 %v117_v5  ;;  %174 = vmatmul.f32.vlgmr.msra.gmra.mxu1 %v118_v6 }
  0x9e   : >> { %v172_v9 = vpop.f32.mrf.mxu0  ;;  %v175_v10 = vpop.f32.mrf.mxu1 }
  0x9f   : >> { %v178_v12 = vmul.f32 1.442695, %v172_v9  ;;  %v180_v13 = vmul.f32 1.442695, %v175_v10 }
  0xa1   : >> { %341 = vpow2.f32 %v178_v12 }
  0xa2   : >> { %343 = vpow2.f32 %v180_v13 }
  0xa7   : >> { %v342_v15 = vpop.eup %341 }
  0xa8   : >> { %v344_v17 = vpop.eup %343  ;;  %v188_v18 = vsel %vm186_vm5, 0.0, %v342_v15  ;;  %199 = sbr.rel (%p306_p10) target bundleno = 300 (0x12c), region = 39 }
  0xa9   : >> { %v192_v19 = vadd.f32 %v190_v14, %v188_v18  ;;  %v189_v20 = vsel %vm187_vm6, 0.0, %v344_v17 }
  0xaa   : >> { %v193_v21 = vadd.f32 %v191_v16, %v189_v20 }
  0xab   : >> { %194 = vst.msk [vmem:[#allocation2] sm:$0xff] %vm119_vm0, %v192_v19 }
  0xac   : >> { %195 = vst.msk [vmem:[#allocation2 + $0x8] sm:$0xff] %vm119_vm0, %v193_v21 }
  0xad   : >> { %v200_v22 = vsel %vm143_vm2, %v172_v9, 0.0  ;;  %v201_v24 = vsel %vm144_vm3, %v175_v10, 0.0 }
  0xae   : >> { %v202_v23 = vsel %vm119_vm0, %v200_v22, 0.0  ;;  %v205_v25 = vsel %vm119_vm0, %v201_v24, 0.0 }
  0xaf   : >> { %203 = vadd.xlane.f32.xlu0 %v202_v23 }
  0xb7   : >> { %206 = vadd.xlane.f32.xlu0 %v205_v25 }
 0x122   : >> { %v204_v26 = vpop.xlane.xlu0 %203 }
 0x123   : >> { %208 = vst.msk [vmem:[#allocation3] sm:$0xff] %vm122_vm1, %v204_v26 }
 0x12a   : >> { %v207_v27 = vpop.xlane.xlu0 %206 }
 0x12b   : >> { %209 = vst.msk [vmem:[#allocation3 + $0x8] sm:$0xff] %vm122_vm1, %v207_v27 }
 0x12c PF: >> { %s150_s28 = sadd.s32 1, %s397_s28  }
 0x12d   : >> { %p147_p11 = scmp.ge.s32.totalorder %s150_s28, 2  }
 0x12e   : > { %v222_v34 = vld [vmem:[#allocation3] sm:$0xff] (%p147_p11) }
 0x12f   : > { %149 = sbr.rel (!%p147_p11) target bundleno = 23 (0x17), region = 69 }
 0x131   : > { %v210_v28 = vld [vmem:[#allocation2] sm:$0xff] (%p147_p11) }
 0x132   : > { %v212_v29 = vsel (%p147_p11), %vm119_vm0, %v210_v28, 0.0  ;;  %v211_v30 = vld [vmem:[#allocation2 + $0x8] sm:$0xff] (%p147_p11)  ;;  %v223_v39 = vld [vmem:[#allocation3 + $0x8] sm:$0xff] (%p147_p11) }
 0x133   : > { %213 = vadd.xlane.f32.xlu0 (%p147_p11), %v212_v29  ;;  %v215_v31 = vsel (%p147_p11), %vm119_vm0, %v211_v30, 0.0 }
 0x13b   : > { %216 = vadd.xlane.f32.xlu0 %v215_v31 }
 0x1a6   : > { %v214_v32 = vpop.xlane.xlu0 %213 }
 0x1a7   : > { %345 = vlog2.f32 %v214_v32 }
 0x1ad   : > { %v346_v33 = vpop.eup %345 }
 0x1ae   : > { %v219_v35 = vmul.f32 0.6931472, %v346_v33  ;;  %v217_v36 = vpop.xlane.xlu0 %216 }
 0x1af   : > { %347 = vlog2.f32 %v217_v36 }
 0x1b0   : > { %v224_v37 = vsub.f32 %v219_v35, %v222_v34 }
 0x1b2   : > { %226 = vst.msk [vmem:[%s446_s23] sm:$0xff] %vm122_vm1, %v224_v37 }
 0x1b5   : > { %v348_v38 = vpop.eup %347 }
 0x1b6   : > { %v221_v40 = vmul.f32 0.6931472, %v348_v38 }
 0x1b8   : > { %v225_v41 = vsub.f32 %v221_v40, %v223_v39 }
 0x1ba   : > { %227 = vst.msk [vmem:[%s446_s23 + $0x8] sm:$0xff] %vm122_vm1, %v225_v41 }
 0x1bb PF: > { %s12_s6 = sadd.s32 1, %s393_s6  }
 0x1bc   : > { %p9_p12 = scmp.ge.s32.totalorder %s12_s6, 4  }
 0x1be   :  { %11 = sbr.rel (!%p9_p12) target bundleno = 1 (0x1), region = 80 }
 0x1c3   :  { %250 = vsyncpa [#allocation5], 1 }
 0x1c4   :  { %252 = vsyncpa [#allocation5 + $0x1], 1 }

</bundles_post_ra>
